<compile_context>
chip_gen: v7x
topology: tpu7x:2x2x1
jax: 0.10.0
libtpu: 0.0.40
codegen_flags: <defaults>
</compile_context>

<pallas_src>
import functools
from math import ceil

import jax
import jax.numpy as jnp
from jax.experimental import pallas as pl
from jax.experimental.pallas import tpu as pltpu


def window_partition(x, window_size):
    """x: (N, C, T, J, E) -> (N, C, Tw, Jw*Ew, TokenNum). Matches the PyTorch reference."""
    N, C, T, J, E = x.shape
    Tw, Jw, Ew = window_size
    pad_T = (Tw - T % Tw) % Tw
    pad_J = (Jw - J % Jw) % Jw
    pad_E = (Ew - E % Ew) % Ew
    # F.pad(..., mode='replicate') on the last three dims == jnp.pad mode='edge'
    x = jnp.pad(x, ((0, 0), (0, 0), (0, pad_T), (0, pad_J), (0, pad_E)), mode="edge")
    N, C, T, J, E = x.shape
    x = x.reshape(N, C, Tw, T // Tw, Jw, J // Jw, Ew, E // Ew)
    x = x.transpose(0, 1, 2, 4, 6, 3, 5, 7)
    x = x.reshape(N, C, Tw, Jw * Ew, (T // Tw) * (J // Jw) * (E // Ew))
    return x


def _fused_kernel(x_ref, we_ref, be_ref, wf_ref, bf_ref, o_ref, *, inv_p):
    """One grid step == one sample. Channels-first; positions P are lane-dense.

    x_ref : (1, C_in, P)    windowed input positions
    we_ref: (C_out, C_in)   conv weight with BN scale folded in
    be_ref: (C_out, 1)      conv bias with BN scale/shift folded in
    wf_ref: (C_out, Cpad)   fc weight (transposed, class dim zero-padded to 128)
    bf_ref: (1, Cpad)       fc bias (zero-padded)
    o_ref : (1, 1, Cpad)    logits for this sample
    """
    x = x_ref[0]                                                      # (C_in, P)
    # 1x1x1 Conv3d (+ folded eval BN) == (C_out,C_in) @ (C_in,P); output lane-dense.
    y = jnp.dot(we_ref[...], x, preferred_element_type=jnp.float32) + be_ref[...]
    # LeakyReLU(0.1)
    y = jnp.where(y >= 0, y, 0.1 * y)
    # mean over positions (lane reduction), then fc once: broadcast-mul + sublane reduce
    feat = jnp.sum(y, axis=-1, keepdims=True) * inv_p                 # (C_out, 1)
    logits = jnp.sum(feat * wf_ref[...], axis=0, keepdims=True) + bf_ref[...]  # (1, Cpad)
    o_ref[0] = logits


def istanet_forward(x, params, window_size):
    """x: (N, C, T, J, E). params are the raw module params. Returns (N, num_classes)."""
    (conv_w, conv_b, bn_gamma, bn_beta, bn_mean, bn_var, bn_eps, fc_w, fc_b) = params

    xw = window_partition(x, window_size)             # (N, C, Tw, Jw*Ew, Tok)
    N, C, Tw, JwEw, Tok = xw.shape
    P = Tw * JwEw * Tok
    # channels-first flatten: pure reshape (no HBM transpose); P lands on the lane axis
    x3d = xw.reshape(N, C, P).astype(jnp.float32)

    c_out = conv_w.shape[0]
    num_classes = fc_w.shape[0]

    # Fold eval-mode BatchNorm into the 1x1x1 conv (host-side constant folding).
    bn_scale = bn_gamma / jnp.sqrt(bn_var + bn_eps)                    # (c_out,)
    bn_shift = bn_beta - bn_mean * bn_scale
    we_fold = (conv_w * bn_scale[:, None]).astype(jnp.float32)          # (c_out, c_in)
    be_fold = ((conv_b * bn_scale + bn_shift)[:, None]).astype(jnp.float32)  # (c_out, 1)

    # fc weight transposed to (c_out, classes), class dim zero-padded to a lane multiple.
    c_pad = max(128, ((num_classes + 127) // 128) * 128)
    wf_pad = jnp.zeros((c_out, c_pad), jnp.float32).at[:, :num_classes].set(fc_w.T)
    bf_pad = jnp.zeros((1, c_pad), jnp.float32).at[0, :num_classes].set(fc_b)

    kernel = functools.partial(_fused_kernel, inv_p=1.0 / P)
    out = pl.pallas_call(
        kernel,
        out_shape=jax.ShapeDtypeStruct((N, 1, c_pad), jnp.float32),
        grid_spec=pltpu.PrefetchScalarGridSpec(
            num_scalar_prefetch=0,
            grid=(N,),
            in_specs=[
                pl.BlockSpec((1, C, P), lambda n: (n, 0, 0)),
                pl.BlockSpec((c_out, C), lambda n: (0, 0)),
                pl.BlockSpec((c_out, 1), lambda n: (0, 0)),
                pl.BlockSpec((c_out, c_pad), lambda n: (0, 0)),
                pl.BlockSpec((1, c_pad), lambda n: (0, 0)),
            ],
            out_specs=pl.BlockSpec((1, 1, c_pad), lambda n: (n, 0, 0)),
        ),
        compiler_params=pltpu.CompilerParams(
            dimension_semantics=("parallel",)),
    )(x3d, we_fold, be_fold, wf_pad, bf_pad)
    return out.reshape(N, c_pad)[:, :num_classes]


if __name__ == "__main__":
    key = jax.random.PRNGKey(0)

    # small shapes consistent with the module's forward
    N, num_channels, T, J, E = 2, 3, 16, 8, 2        # (N, C, T, J, E)
    window_size = (4, 4, 2)
    num_classes = 10
    config = [(16, 16, 16)]                          # in == out channels (blocks identity)
    in_channels = config[0][0]
    out_channels = config[-1][1]
    num_tokens = (ceil(T / window_size[0]) * ceil(J / window_size[1])
                  * ceil(E / window_size[2]))

    keys = jax.random.split(key, 8)
    x = jax.random.normal(keys[0], (N, num_channels, T, J, E), jnp.float32)

    # embed: Conv3d(num_channels, in_channels, 1)
    std_e = (2.0 / (num_channels + in_channels)) ** 0.5
    conv_w = jax.random.normal(keys[1], (in_channels, num_channels), jnp.float32) * std_e
    conv_b = jax.random.normal(keys[2], (in_channels,), jnp.float32) * 0.01
    # BatchNorm3d(in_channels), eval mode, non-trivial running stats
    bn_eps = 1e-5
    bn_gamma = 1.0 + 0.1 * jax.random.normal(keys[3], (in_channels,), jnp.float32)
    bn_beta = 0.1 * jax.random.normal(keys[4], (in_channels,), jnp.float32)
    bn_mean = 0.1 * jax.random.normal(keys[5], (in_channels,), jnp.float32)
    bn_var = 1.0 + 0.1 * jnp.abs(jax.random.normal(keys[6], (in_channels,), jnp.float32))
    # fc: Linear(out_channels, num_classes) — xavier_normal weight, zero bias (fc_init)
    std_f = (2.0 / (out_channels + num_classes)) ** 0.5
    fc_w = jax.random.normal(keys[7], (num_classes, out_channels), jnp.float32) * std_f
    fc_b = jnp.zeros((num_classes,), jnp.float32)

    params = (conv_w, conv_b, bn_gamma, bn_beta, bn_mean, bn_var, bn_eps, fc_w, fc_b)
    out = jax.block_until_ready(istanet_forward(x, params, window_size))

    # pure-JAX reference (same math as the PyTorch forward; dropout is eval no-op)
    xw = window_partition(x, window_size)
    y = jnp.einsum("oc,nctjk->notjk", conv_w, xw) + conv_b.reshape(1, -1, 1, 1, 1)
    y = (y - bn_mean.reshape(1, -1, 1, 1, 1)) / jnp.sqrt(
        bn_var.reshape(1, -1, 1, 1, 1) + bn_eps)
    y = y * bn_gamma.reshape(1, -1, 1, 1, 1) + bn_beta.reshape(1, -1, 1, 1, 1)
    y = jnp.where(y >= 0, y, 0.1 * y)
    feat = y.reshape(N, out_channels, -1).mean(-1)
    ref = feat @ fc_w.T + fc_b
    assert jnp.allclose(out, ref, atol=1e-4, rtol=1e-4)

    print("KERNEL_OK")
</pallas_src>

<mosaic_0001>
module attributes {stable_mosaic.version = 11 : i64} {
  func.func @_fused_kernel(%arg0: i32, %arg1: memref<1x3x256xf32, #tpu.memory_space<vmem>>, %arg2: memref<16x3xf32, #tpu.memory_space<vmem>>, %arg3: memref<16x1xf32, #tpu.memory_space<vmem>>, %arg4: memref<16x128xf32, #tpu.memory_space<vmem>>, %arg5: memref<1x128xf32, #tpu.memory_space<vmem>>, %arg6: memref<1x1x128xf32, #tpu.memory_space<vmem>>) attributes {dimension_semantics = [#tpu.dimension_semantics<parallel>], iteration_bounds = array<i64: 2>, scalar_prefetch = 0 : i64, scratch_operands = 0 : i64, tpu.core_type = #tpu.core_type<tc>, window_params = [{transform_indices = @transform_0, window_bounds = array<i64: 1, 3, 256>}, {pipeline_mode = #tpu.pipeline_mode<synchronous>, transform_indices = @transform_1, window_bounds = array<i64: 16, 3>}, {pipeline_mode = #tpu.pipeline_mode<synchronous>, transform_indices = @transform_2, window_bounds = array<i64: 16, 1>}, {pipeline_mode = #tpu.pipeline_mode<synchronous>, transform_indices = @transform_3, window_bounds = array<i64: 16, 128>}, {pipeline_mode = #tpu.pipeline_mode<synchronous>, transform_indices = @transform_4, window_bounds = array<i64: 1, 128>}, {transform_indices = @transform_5, window_bounds = array<i64: 1, 1, 128>}]} {
    %c0 = arith.constant 0 : index
    %c0_0 = arith.constant 0 : index
    %c0_1 = arith.constant 0 : index
    %0 = vector.load %arg1[%c0, %c0_0, %c0_1] : memref<1x3x256xf32, #tpu.memory_space<vmem>>, vector<1x3x256xf32>
    %1 = vector.shape_cast %0 : vector<1x3x256xf32> to vector<3x256xf32>
    %c0_2 = arith.constant 0 : index
    %c0_3 = arith.constant 0 : index
    %2 = vector.load %arg2[%c0_2, %c0_3] : memref<16x3xf32, #tpu.memory_space<vmem>>, vector<16x3xf32>
    %cst = arith.constant dense<0.000000e+00> : vector<16x256xf32>
    %3 = tpu.matmul %2, %1, %cst {dimension_numbers = #tpu.dot_dimension_numbers<[1], [0], [0], [1], [0, 0, 1, 1], [], []>} : vector<16x3xf32>, vector<3x256xf32>, vector<16x256xf32> -> vector<16x256xf32>
    %c0_4 = arith.constant 0 : index
    %c0_5 = arith.constant 0 : index
    %4 = vector.load %arg3[%c0_4, %c0_5] : memref<16x1xf32, #tpu.memory_space<vmem>>, vector<16x1xf32>
    %5 = vector.broadcast %4 : vector<16x1xf32> to vector<16x256xf32>
    %6 = arith.addf %3, %5 : vector<16x256xf32>
    %cst_6 = arith.constant 0.000000e+00 : f32
    %7 = vector.broadcast %cst_6 : f32 to vector<16x256xf32>
    %8 = arith.cmpf oge, %6, %7 : vector<16x256xf32>
    %cst_7 = arith.constant 1.000000e-01 : f32
    %9 = vector.broadcast %cst_7 : f32 to vector<16x256xf32>
    %10 = arith.mulf %9, %6 : vector<16x256xf32>
    %11 = arith.select %8, %6, %10 : vector<16x256xi1>, vector<16x256xf32>
    %cst_8 = arith.constant dense<0.000000e+00> : vector<16xf32>
    %12 = vector.multi_reduction <add>, %11, %cst_8 [1] : vector<16x256xf32> to vector<16xf32>
    %13 = vector.shape_cast %12 : vector<16xf32> to vector<16x1xf32>
    %cst_9 = arith.constant 3.906250e-03 : f32
    %14 = vector.broadcast %cst_9 : f32 to vector<16x1xf32>
    %15 = arith.mulf %13, %14 : vector<16x1xf32>
    %c0_10 = arith.constant 0 : index
    %c0_11 = arith.constant 0 : index
    %16 = vector.load %arg4[%c0_10, %c0_11] : memref<16x128xf32, #tpu.memory_space<vmem>>, vector<16x128xf32>
    %17 = vector.broadcast %15 : vector<16x1xf32> to vector<16x128xf32>
    %18 = arith.mulf %17, %16 : vector<16x128xf32>
    %cst_12 = arith.constant dense<0.000000e+00> : vector<128xf32>
    %19 = vector.multi_reduction <add>, %18, %cst_12 [0] : vector<16x128xf32> to vector<128xf32>
    %20 = vector.shape_cast %19 : vector<128xf32> to vector<1x128xf32>
    %c0_13 = arith.constant 0 : index
    %c0_14 = arith.constant 0 : index
    %21 = vector.load %arg5[%c0_13, %c0_14] : memref<1x128xf32, #tpu.memory_space<vmem>>, vector<1x128xf32>
    %22 = arith.addf %20, %21 : vector<1x128xf32>
    %c0_15 = arith.constant 0 : index
    %c0_16 = arith.constant 0 : index
    %c0_17 = arith.constant 0 : index
    %23 = vector.load %arg6[%c0_15, %c0_16, %c0_17] : memref<1x1x128xf32, #tpu.memory_space<vmem>>, vector<1x1x128xf32>
    %24 = vector.shape_cast %23 : vector<1x1x128xf32> to vector<1x128xf32>
    %25 = vector.shape_cast %22 : vector<1x128xf32> to vector<1x1x128xf32>
    tpu.vector_store %arg6[%c0_15, %c0_16, %c0_17], %25 {strides = array<i32>} : memref<1x1x128xf32, #tpu.memory_space<vmem>>, vector<1x1x128xf32>,
    return
  }
  func.func @transform_0(%arg0: i32) -> (i32, i32, i32) {
    %c0_i32 = arith.constant 0 : i32
    %c0_i32_0 = arith.constant 0 : i32
    %c0_i32_1 = arith.constant 0 : i32
    return %arg0, %c0_i32, %c0_i32_0 : i32, i32, i32
  }
  func.func @transform_1(%arg0: i32) -> (i32, i32) {
    %c0_i32 = arith.constant 0 : i32
    %c0_i32_0 = arith.constant 0 : i32
    %c0_i32_1 = arith.constant 0 : i32
    return %c0_i32, %c0_i32_0 : i32, i32
  }
  func.func @transform_2(%arg0: i32) -> (i32, i32) {
    %c0_i32 = arith.constant 0 : i32
    %c0_i32_0 = arith.constant 0 : i32
    %c0_i32_1 = arith.constant 0 : i32
    return %c0_i32, %c0_i32_0 : i32, i32
  }
  func.func @transform_3(%arg0: i32) -> (i32, i32) {
    %c0_i32 = arith.constant 0 : i32
    %c0_i32_0 = arith.constant 0 : i32
    %c0_i32_1 = arith.constant 0 : i32
    return %c0_i32, %c0_i32_0 : i32, i32
  }
  func.func @transform_4(%arg0: i32) -> (i32, i32) {
    %c0_i32 = arith.constant 0 : i32
    %c0_i32_0 = arith.constant 0 : i32
    %c0_i32_1 = arith.constant 0 : i32
    return %c0_i32, %c0_i32_0 : i32, i32
  }
  func.func @transform_5(%arg0: i32) -> (i32, i32, i32) {
    %c0_i32 = arith.constant 0 : i32
    %c0_i32_0 = arith.constant 0 : i32
    %c0_i32_1 = arith.constant 0 : i32
    return %arg0, %c0_i32, %c0_i32_0 : i32, i32, i32
  }
}

</mosaic_0001>

<bundles_post_ra>
// kernel: tpu_custom_call.1
= control target key start
LH: loop header
LB: loop body
LE: loop exit
PB: predicated region body
PF: predicated region fallthrough
CT: control target
= control target key end

     0   :  { %10 = vsyncpa [#allocation3], 0  ;;  %s707_s0 = inlined_call_operand.vmem [shape: f32[2,3,256], index: 0, kind: input, shape index: {}]   ;;  %s708_s1 = inlined_call_operand.vmem [shape: f32[16,3], index: 1, kind: input, shape index: {}]   ;;  %s709_s2 = inlined_call_operand.vmem [shape: f32[16,1], index: 2, kind: input, shape index: {}]   ;;  %s710_s3 = inlined_call_operand.vmem [shape: f32[16,128], index: 3, kind: input, shape index: {}]   ;;  %s711_s4 = inlined_call_operand.vmem [shape: f32[1,128], index: 4, kind: input, shape index: {}]   ;;  %s712_s5 = inlined_call_operand.hbm [shape: f32[2,1,128], index: 5, kind: output, shape index: {}]  }
   0x1   :  { %12 = vsyncpa [#allocation3 + $0x1], 0  ;;  %s586_s18 = smov 0   ;;  %s588_s19 = smov 0  }
   0x2   :  { %s590_s20 = smov 0   ;;  %s592_s21 = smov 0  }
   0x3 LB: > { %s607_s22 = sadd.s32 4294967295, %s551_s21   ;;  %s430_s23 = sadd.s32 4294967294, %s551_s21   ;;  %s551_s21 = sphi %s592_s21, %s718_s21   ;;  %s547_s20 = sphi %s590_s20, %s717_s20   ;;  %s543_s19 = sphi %s588_s19, %s716_s19   ;;  %s539_s18 = sphi %s586_s18, %s715_s18  }
   0x4   : > { %s611_s24 = sadd.s32 1, %s551_s21   ;;  %s135_s25 = sadd.s32 1, %s547_s20 }
   0x5   : > { %s132_s26 = ssub.s32 %s551_s21, %s611_s24  ;;  %p145_p0 = scmp.ne.s32.totalorder %s547_s20, %s543_s19 }
   0x6   : > { %p133_p1 = scmp.eq.s32.totalorder %s132_s26, 0  ;;  %p146_p2 = scmp.eq.s32.totalorder %s607_s22, 1 }
   0x7   : > { %p151_p3 = scmp.ne.s32.totalorder %s543_s19, %s539_s18  ;;  %p152_p4 = scmp.eq.s32.totalorder %s430_s23, 1 }
   0x8   : > { %s622_s27 = scalar_select %p133_p1, %s547_s20, %s135_s25  }
   0x9   : > { %p624_p5 = por %p146_p2, %p145_p0  ;;  %p628_p6 = por %p152_p4, %p151_p3 }
   0xa   : > { %p433_p7 = scmp.ge.s32.totalorder %s551_s21, 1  ;;  %p190_p8 = scmp.lt.s32.totalorder %s551_s21, 3 }
   0xc   : > { %p191_p9 = pnand %p433_p7, %p190_p8 }
   0xd   : > { %p217_p10 = scmp.lt.s32.totalorder (!%p191_p9), %s607_s22, 1  ;;  %v553_v0 = vmov (!%p191_p9), 0.0   ;;  %v225_v1 = vld [vmem:[%s709_s2] sm:$0xff] (!%p191_p9)  ;;  %v554_v2 = vmov (!%p191_p9), 0   ;;  %v226_v3 = vld [vmem:[%s709_s2 + $0x8] sm:$0xff] (!%p191_p9)  ;;  %vm246_vm0 = vcmask (!%p191_p9), 1042432  }
   0xe   : > { %194 = sbr.rel (%p191_p9) target bundleno = 430 (0x1ae), region = 40  ;;  %315 = vmatprep.mubr.f32.mxu0 (!%p191_p9), %v553_v0  ;;  %321 = vmatprep.mubr.f32.mxu1 (!%p191_p9), %v553_v0  ;;  %v223_v6 = vld [vmem:[%s708_s1] sm:$0xff] (!%p191_p9)  ;;  %vm239_vm1 = vcmask (!%p191_p9), 23552   ;;  %v224_v7 = vld [vmem:[%s708_s1 + $0x8] sm:$0xff] (!%p191_p9)  ;;  %s215_s6 = sand.u32 (!%p191_p9), 1, %s543_s19  }
   0xf   : > { %487 = vset.pattern.permute.xlu0 (!%p191_p9), %v554_v2  ;;  %v348_v30 = vld [vmem:[%s710_s3] sm:$0xff] (!%p191_p9)  ;;  %v349_v31 = vld [vmem:[%s710_s3 + $0x8] sm:$0xff] (!%p191_p9)  ;;  %s440_s9 = sshll.u32 (!%p191_p9), %s607_s22, 4  ;;  %s216_s10 = scalar_lea.vmem (!%p191_p9), [#allocation2], %s215_s6 }
  0x10   : > { %229 = vperm.xlu0 (!%p191_p9), %487, %v225_v1   ;;  %v359_v42 = vld [vmem:[%s711_s4] sm:$0x1] (!%p191_p9)  ;;  %s375_s11 = sshll.u32 (!%p191_p9), %s216_s10, 4  ;;  %s665_s14 = scalar_lea.hbm (!%p191_p9), %s712_s5, %s440_s9  ;;  %s667_s11 = int_to_ptr.vmem [resolvable:$true] %s375_s11 }
  0x11   : > { %s363_s15 = scalar_lea.sflag (!%p191_p9), [#allocation3], %s215_s6  ;;  %s489_s16 = scalar_lea.vmem (!%p191_p9), %s667_s11, 16 }
  0x12   : > { %p490_p11 = scmp.ne.s32.totalorder (!%p191_p9), %s667_s11, %s489_s16 }
  0x14   : > { %234 = vperm.xlu0 (!%p191_p9), %487, %v226_v3   ;;  %p491_p12 = pnand (!%p191_p9), %p490_p11, %p624_p5 }
  0x15   : > { %s218_s7 = scalar_select %p217_p10, %s607_s22, 1 }
  0x16   : > { %p492_p13 = pneg %p491_p12  ;;  %s555_s22 = smov [#allocation2]  }
  0x17   : > { %s443_s8 = sshll.u32 %s218_s7, 3  ;;  %s493_s17 = sshll.u32 %s555_s22, 4  ;;  %s494_s17 = int_to_ptr.vmem [resolvable:$false] %s493_s17 }
  0x18   : > { %s221_s13 = scalar_lea.vmem %s707_s0, %s443_s8  ;;  %s495_s23 = scalar_lea.vmem %s494_s17, 32 }
  0x19   : > { %v222_v4 = vld [vmem:[%s221_s13] sm:$0x77]  ;;  %p496_p0 = scmp.lt.s32.totalorder %s667_s11, %s494_s17  ;;  %p497_p1 = scmp.lt.s32.totalorder %s495_s23, %s489_s16 }
  0x1a   : > { %v238_v5 = vcombine.high %v222_v4, %v222_v4 }
  0x1b   : > { %p498_p2 = por %p497_p1, %p496_p0 }
  0x1c   : > { %436 = vmatprep.subr.msk.mxu0 %vm246_vm0, %v238_v5  ;;  %444 = vmatprep.subr.msk.mxu1 %vm246_vm0, %v238_v5 }
  0x1d   : > { %437 = vmatpush1.msk.msra.mxu0 %vm246_vm0, %v222_v4  ;;  %445 = vmatpush1.msk.msra.mxu1 %vm246_vm0, %v222_v4  ;;  %p499_p3 = pnand %p498_p2, %p492_p13 }
  0x1e   : > { %438 = vmatmul.mubr.msk.f32.vlgmr.msra.gmra.mrb[0].mxu0 %vm239_vm1, %v223_v6  ;;  %439 = vmatmul.mubr.msk.f32.vlgmr.msra.gmra.mrb[0].mxu1 %vm239_vm1, %v224_v7 }
  0x8f   : > { %v230_v8 = vpop.permute.xlu0 %229 }
  0x93   : > { %v235_v9 = vpop.permute.xlu0 %234 }
  0xf1   : > { %v317_v10 = vpop.f32.mrb[0].mxu0  ;;  %v323_v11 = vpop.f32.mrb[0].mxu1 }
  0xf2   : > { %v318_v12 = vadd.f32 %v317_v10, %v230_v8  ;;  %v324_v13 = vadd.f32 %v323_v11, %v235_v9  ;;  %v319_v14 = vpop.f32.mrb[1].mxu0  ;;  %v325_v15 = vpop.f32.mrb[1].mxu1 }
  0xf3   : > { %v320_v16 = vadd.f32 %v319_v14, %v230_v8  ;;  %v326_v17 = vadd.f32 %v325_v15, %v235_v9 }
  0xf4   : > { %v332_v18 = vmul.f32 0.1, %v318_v12  ;;  %v334_v19 = vmul.f32 0.1, %v324_v13  ;;  %vm328_vm2 = vcmp.ge.f32.partialorder %v318_v12, 0.0  ;;  %vm330_vm3 = vcmp.ge.f32.partialorder %v324_v13, 0.0 }
  0xf5   : > { %v333_v20 = vmul.f32 0.1, %v320_v16  ;;  %v335_v21 = vmul.f32 0.1, %v326_v17  ;;  %vm329_vm4 = vcmp.ge.f32.partialorder %v320_v16, 0.0  ;;  %vm331_vm5 = vcmp.ge.f32.partialorder %v326_v17, 0.0 }
  0xf6   : > { %v336_v22 = vsel %vm328_vm2, %v318_v12, %v332_v18  ;;  %v338_v23 = vsel %vm330_vm3, %v324_v13, %v334_v19 }
  0xf7   : > { %v337_v24 = vsel %vm329_vm4, %v320_v16, %v333_v20  ;;  %v339_v25 = vsel %vm331_vm5, %v326_v17, %v335_v21 }
  0xf8   : > { %v340_v26 = vadd.f32 %v337_v24, %v336_v22  ;;  %v343_v27 = vadd.f32 %v339_v25, %v338_v23 }
  0xfa   : > { %341 = vadd.xlane.f32.xlu1 %v340_v26 }
  0xfe   : > { %344 = vadd.xlane.f32.xlu1 %v343_v27 }
 0x187   : > { %v342_v28 = vpop.xlane.xlu1 %341 }
 0x188   : > { %v346_v29 = vmul.f32 0.00390625, %v342_v28 }
 0x18a   : > { %v350_v34 = vmul.f32 %v348_v30, %v346_v29 }
 0x18b   : > { %v345_v32 = vpop.xlane.xlu1 %344 }
 0x18c   : > { %v347_v33 = vmul.f32 0.00390625, %v345_v32 }
 0x18e   : > { %v351_v35 = vmul.f32 %v349_v31, %v347_v33 }
 0x190   : > { %v352_v36 = vadd.f32 %v351_v35, %v350_v34 }
 0x192   : > { %v353_v37 = vrot.slane %v352_v36, 4 }
 0x194   : > { %v354_v38 = vadd.f32 %v353_v37, %v352_v36 }
 0x196   : > { %v355_v39 = vrot.slane %v354_v38, 2 }
 0x198   : > { %v356_v40 = vadd.f32 %v355_v39, %v354_v38 }
 0x19a   : > { %v357_v41 = vrot.slane %v356_v40, 1 }
 0x19c   : > { %v358_v43 = vadd.f32 %v357_v41, %v356_v40 }
 0x19e   : > { %v360_v44 = vadd.f32 %v359_v42, %v358_v43 }
 0x1a0   : > { %361 = vst [vmem:[%s216_s10] sm:$0x1] %v360_v44 }
 0x1a1   : > { %502 = shalt.err (!%p499_p3)
}
 0x1a2   : > { %s503_s25 = scalar_lea.hbm %s665_s14, 16  ;;  %s507_s6 = scalar_lea.hbm %s712_s5, 32 }
 0x1a3   : > { %p504_p4 = scmp.ne.s32.totalorder %s665_s14, %s503_s25  ;;  %p508_p9 = scmp.lt.u32.totalorder %s665_s14, %s712_s5 }
 0x1a4   : > { %p509_p10 = scmp.lt.u32.totalorder %s507_s6, %s503_s25  ;;  %p511_p12 = scmp.lt.u32.totalorder %s503_s25, %s665_s14 }
 0x1a5   : > { %p505_p7 = pnand %p504_p4, %p624_p5 }
 0x1a6   : > { %p510_p11 = por %p509_p10, %p508_p9 }
 0x1a7   : > { %p506_p8 = pneg %p505_p7 }
 0x1a8   : > { %p512_p13 = por %p511_p12, %p510_p11 }
 0x1aa   : > { %p513_p0 = pnand %p512_p13, %p506_p8 }
 0x1ac   : > { %516 = shalt.err (!%p513_p0)
}
 0x1ad   : > { %446 = dma.vmem_to_hbm [thread:$0]  (%p624_p5), %s667_s11, 16, %s665_s14, %s363_s15  }
 0x1ae PF: > { %p452_p1 = scmp.ge.s32.totalorder %s551_s21, 2  ;;  %s387_s9 = sand.u32 1, %s539_s18  }
 0x1af   : > { %s388_s10 = scalar_lea.sflag [#allocation3], %s387_s9 }
 0x1b0   : > { %p449_p2 = pnand %p452_p1, %p628_p6 }
 0x1b2   : > { %534 = dma.done.wait (!%p449_p2), %s388_s10, 16  }
 0x1b3   : > { %536 = vsyncadd (!%p449_p2), %s388_s10, 4294967280  ;;  %p15_p3 = scmp.ge.s32.totalorder %s611_s24, 4   ;;  %s715_s18 = smov %s543_s19 }
 0x1b4   : > { %s716_s19 = smov %s547_s20  ;;  %s717_s20 = smov %s622_s27 }
 0x1b5   : > { %s718_s21 = smov %s611_s24  ;;  %17 = sbr.rel (!%p15_p3) target bundleno = 3 (0x3), region = 75 }
 0x1bc   :  { %392 = vsyncpa [#allocation3], 1 }
 0x1bd   :  { %394 = vsyncpa [#allocation3 + $0x1], 1 }

</bundles_post_ra>
